<compile_context>
chip_gen: v7x
topology: tpu7x:2x2x1
jax: 0.10.0
libtpu: 0.0.40
codegen_flags: <defaults>
</compile_context>

<pallas_src>
import functools

import jax
import jax.numpy as jnp
from jax.experimental import pallas as pl
from jax.experimental.pallas import tpu as pltpu

_LANE = 128


def _round_up(n, m):
    return ((n + m - 1) // m) * m


def _cdiv(a, b):
    return -(-a // b)


def _actor_kernel(x_ref, w1_ref, b1_ref, w2_ref, b2_ref, w3_ref, b3_ref, o_ref,
                  *, bf16_epilogue):
    # x tile: (TB, state_dim) f32 or bf16. Weights bf16 (in, out); biases f32 (1, out).
    x = x_ref[...].astype(jnp.bfloat16)   # no-op if x already bf16

    # Layer 1: Linear(state_dim -> 128) + ReLU  (1/scale pre-folded into w1)
    h1 = jnp.dot(x, w1_ref[...], preferred_element_type=jnp.float32)
    h1 = jnp.maximum(h1 + b1_ref[...], 0.0)

    # Layer 2: Linear(128 -> 128) + ReLU
    h2 = jnp.dot(h1.astype(jnp.bfloat16), w2_ref[...],
                 preferred_element_type=jnp.float32)
    h2 = jnp.maximum(h2 + b2_ref[...], 0.0)

    # Layer 3: Linear(128 -> action_dim padded to 128 lanes) + tanh, bf16 output
    h3 = jnp.dot(h2.astype(jnp.bfloat16), w3_ref[...],
                 preferred_element_type=jnp.float32)
    z = h3 + b3_ref[...]
    if bf16_epilogue:
        # v6e/v7x have a bf16 EUP path: halve tanh pushes for the TBx128 epilogue.
        o_ref[...] = jnp.tanh(z.astype(jnp.bfloat16)).astype(o_ref.dtype)
    else:
        o_ref[...] = jnp.tanh(z).astype(o_ref.dtype)


def _bf16_epilogue_supported():
    try:
        kind = jax.devices()[0].device_kind.lower()
    except Exception:
        return False
    # bf16 EUP exists on v6e/v7x; keep f32 tanh on v2/v3/v4/v5 generations.
    return not any(tag in kind for tag in ("v2", "v3", "v4", "v5"))


def init_actor_params(key, state_dim, action_dim, l1_size=128, l2_size=128):
    """Mirrors the PyTorch module's init.

    reset_parameters only overrides the *weights*:
      w1, w2 ~ U(-1/sqrt(fan_in), 1/sqrt(fan_in)); w3 ~ U(-0.003, 0.003).
    Biases keep nn.Linear's default U(-1/sqrt(fan_in), 1/sqrt(fan_in)).
    Weights stored (in, out), i.e. transposed relative to PyTorch's (out, in).
    """
    k = jax.random.split(key, 6)

    def u(key, shape, lo, hi):
        return jax.random.uniform(key, shape, jnp.float32, minval=lo, maxval=hi)

    lim1 = 1.0 / (state_dim ** 0.5)
    lim2 = 1.0 / (l1_size ** 0.5)
    lim3 = 1.0 / (l2_size ** 0.5)
    return {
        "w1": u(k[0], (state_dim, l1_size), -lim1, lim1),
        "b1": u(k[1], (1, l1_size), -lim1, lim1),
        "w2": u(k[2], (l1_size, l2_size), -lim2, lim2),
        "b2": u(k[3], (1, l2_size), -lim2, lim2),
        "w3": u(k[4], (l2_size, action_dim), -0.003, 0.003),
        "b3": u(k[5], (1, action_dim), -lim3, lim3),
    }


def prepare_actor_params(params, scale):
    """One-time param transform: fold 1/scale into w1, cast weights to bf16,
    zero-pad the final layer to a lane-dense 128-wide output."""
    action_dim = params["w3"].shape[1]
    l2_size = params["w3"].shape[0]
    out_pad = _round_up(action_dim, _LANE)

    w3_p = jnp.zeros((l2_size, out_pad), jnp.float32).at[:, :action_dim].set(
        params["w3"])
    b3_p = jnp.zeros((1, out_pad), jnp.float32).at[:, :action_dim].set(
        params["b3"])

    return {
        "w1": (params["w1"] * (1.0 / float(scale))).astype(jnp.bfloat16),
        "b1": params["b1"].astype(jnp.float32),
        "w2": params["w2"].astype(jnp.bfloat16),
        "b2": params["b2"].astype(jnp.float32),
        "w3": w3_p.astype(jnp.bfloat16),   # padded columns are exactly zero
        "b3": b3_p,                        # padded entries are exactly zero
    }


def _choose_batch_tiling(B, batch_tile):
    """Balanced tiling: minimize padding, and aim for >=2 grid steps (v7x 2-TC
    sharding) unless the batch is too small for that to make sense."""
    n = max(_cdiv(B, batch_tile), 2)
    TB = _round_up(_cdiv(B, n), 8)
    n = _cdiv(B, TB)          # tiny batches collapse back to a single tile
    return TB, n * TB, n


def actor_forward(x, prepped, action_dim, *, batch_tile=2048):
    """x: (B, state_dim) f32 or bf16. prepped: output of prepare_actor_params.
    Returns (B, action_dim) f32."""
    B, state_dim = x.shape
    l1_size = prepped["w1"].shape[1]
    l2_size = prepped["w2"].shape[1]
    out_pad = prepped["w3"].shape[1]

    TB, Bp, n_tiles = _choose_batch_tiling(B, batch_tile)
    if Bp != B:
        x = jnp.pad(x, ((0, Bp - B), (0, 0)))

    grid = (n_tiles,)
    const = lambda i: (0, 0)   # weights/biases: same block every step -> VMEM-resident

    # Scoped-VMEM budget: x + out double-buffered, bf16 weights, f32 biases,
    # plus headroom for the three (TB, 128) f32 intermediates.
    x_bytes = 2 if x.dtype == jnp.bfloat16 else 4
    vmem_est = (2 * TB * state_dim * x_bytes
                + 2 * TB * out_pad * 2
                + 2 * (state_dim * l1_size + l1_size * l2_size + l2_size * out_pad)
                + 4 * (l1_size + l2_size + out_pad)
                + 3 * TB * max(l1_size, l2_size, out_pad) * 4)
    vmem_limit = int(min(max(2 * vmem_est, 32 * 1024 * 1024), 60 * 1024 * 1024))

    kernel = functools.partial(_actor_kernel,
                               bf16_epilogue=_bf16_epilogue_supported())

    out = pl.pallas_call(
        kernel,
        out_shape=jax.ShapeDtypeStruct((Bp, out_pad), jnp.bfloat16),
        grid_spec=pltpu.PrefetchScalarGridSpec(
            num_scalar_prefetch=0,
            grid=grid,
            in_specs=[
                pl.BlockSpec((TB, state_dim), lambda i: (i, 0)),     # x
                pl.BlockSpec((state_dim, l1_size), const),            # w1
                pl.BlockSpec((1, l1_size), const),                    # b1
                pl.BlockSpec((l1_size, l2_size), const),              # w2
                pl.BlockSpec((1, l2_size), const),                    # b2
                pl.BlockSpec((l2_size, out_pad), const),              # w3 (padded)
                pl.BlockSpec((1, out_pad), const),                    # b3 (padded)
            ],
            out_specs=pl.BlockSpec((TB, out_pad), lambda i: (i, 0)),
        ),
        compiler_params=pltpu.CompilerParams(
            dimension_semantics=("parallel",),
            vmem_limit_bytes=vmem_limit),
    )(x, prepped["w1"], prepped["b1"], prepped["w2"], prepped["b2"],
      prepped["w3"], prepped["b3"])

    # Drop batch padding and zero-padded action lanes; restore f32 for the caller.
    return out[:B, :action_dim].astype(jnp.float32)


def actor_ref(x, params, scale):
    """Pure-JAX f32 reference of the same forward pass (PyTorch semantics)."""
    h = x / scale
    h = jax.nn.relu(h @ params["w1"] + params["b1"])
    h = jax.nn.relu(h @ params["w2"] + params["b2"])
    return jnp.tanh(h @ params["w3"] + params["b3"])


if __name__ == "__main__":
    key = jax.random.PRNGKey(0)
    k_params, k_x1, k_x2 = jax.random.split(key, 3)

    state_dim = 16
    action_dim = 4
    scale = 2.0

    params = init_actor_params(k_params, state_dim, action_dim)
    prepped = prepare_actor_params(params, scale)

    # Small batch (single grid step).
    x1 = jax.random.normal(k_x1, (8, state_dim), jnp.float32)
    out1 = jax.block_until_ready(actor_forward(x1, prepped, action_dim))
    ref1 = actor_ref(x1, params, scale)
    assert out1.shape == (8, action_dim), out1.shape
    assert jnp.allclose(out1, ref1, atol=2e-2, rtol=2e-2), "mismatch (batch=8)"

    # Awkward batch (exercises balanced 2-tile grid + batch padding).
    x2 = jax.random.normal(k_x2, (20, state_dim), jnp.float32)
    out2 = jax.block_until_ready(actor_forward(x2, prepped, action_dim))
    ref2 = actor_ref(x2, params, scale)
    assert out2.shape == (20, action_dim), out2.shape
    assert jnp.allclose(out2, ref2, atol=2e-2, rtol=2e-2), "mismatch (batch=20)"

    print("KERNEL_OK")
</pallas_src>

<mosaic_0001>
module attributes {stable_mosaic.version = 11 : i64} {
  func.func @_actor_kernel(%arg0: i32, %arg1: memref<8x16xf32, #tpu.memory_space<vmem>>, %arg2: memref<16x128xbf16, #tpu.memory_space<vmem>>, %arg3: memref<1x128xf32, #tpu.memory_space<vmem>>, %arg4: memref<128x128xbf16, #tpu.memory_space<vmem>>, %arg5: memref<1x128xf32, #tpu.memory_space<vmem>>, %arg6: memref<128x128xbf16, #tpu.memory_space<vmem>>, %arg7: memref<1x128xf32, #tpu.memory_space<vmem>>, %arg8: memref<8x128xbf16, #tpu.memory_space<vmem>>) attributes {dimension_semantics = [#tpu.dimension_semantics<parallel>], iteration_bounds = array<i64: 1>, scalar_prefetch = 0 : i64, scratch_operands = 0 : i64, tpu.core_type = #tpu.core_type<tc>, window_params = [{transform_indices = @transform_0, window_bounds = array<i64: 8, 16>}, {pipeline_mode = #tpu.pipeline_mode<synchronous>, transform_indices = @transform_1, window_bounds = array<i64: 16, 128>}, {pipeline_mode = #tpu.pipeline_mode<synchronous>, transform_indices = @transform_2, window_bounds = array<i64: 1, 128>}, {pipeline_mode = #tpu.pipeline_mode<synchronous>, transform_indices = @transform_3, window_bounds = array<i64: 128, 128>}, {pipeline_mode = #tpu.pipeline_mode<synchronous>, transform_indices = @transform_4, window_bounds = array<i64: 1, 128>}, {pipeline_mode = #tpu.pipeline_mode<synchronous>, transform_indices = @transform_5, window_bounds = array<i64: 128, 128>}, {pipeline_mode = #tpu.pipeline_mode<synchronous>, transform_indices = @transform_6, window_bounds = array<i64: 1, 128>}, {transform_indices = @transform_7, window_bounds = array<i64: 8, 128>}]} {
    %c0 = arith.constant 0 : index
    %c0_0 = arith.constant 0 : index
    %0 = vector.load %arg1[%c0, %c0_0] : memref<8x16xf32, #tpu.memory_space<vmem>>, vector<8x16xf32>
    %1 = arith.truncf %0 : vector<8x16xf32> to vector<8x16xbf16>
    %c0_1 = arith.constant 0 : index
    %c0_2 = arith.constant 0 : index
    %2 = vector.load %arg2[%c0_1, %c0_2] : memref<16x128xbf16, #tpu.memory_space<vmem>>, vector<16x128xbf16>
    %cst = arith.constant dense<0.000000e+00> : vector<8x128xf32>
    %3 = tpu.matmul %1, %2, %cst {dimension_numbers = #tpu.dot_dimension_numbers<[1], [0], [0], [1], [0, 0, 1, 1], [], []>} : vector<8x16xbf16>, vector<16x128xbf16>, vector<8x128xf32> -> vector<8x128xf32>
    %c0_3 = arith.constant 0 : index
    %c0_4 = arith.constant 0 : index
    %4 = vector.load %arg3[%c0_3, %c0_4] : memref<1x128xf32, #tpu.memory_space<vmem>>, vector<1x128xf32>
    %5 = vector.broadcast %4 : vector<1x128xf32> to vector<8x128xf32>
    %6 = arith.addf %3, %5 : vector<8x128xf32>
    %cst_5 = arith.constant 0.000000e+00 : f32
    %7 = vector.broadcast %cst_5 : f32 to vector<8x128xf32>
    %8 = arith.maximumf %6, %7 : vector<8x128xf32>
    %9 = arith.truncf %8 : vector<8x128xf32> to vector<8x128xbf16>
    %c0_6 = arith.constant 0 : index
    %c0_7 = arith.constant 0 : index
    %10 = vector.load %arg4[%c0_6, %c0_7] : memref<128x128xbf16, #tpu.memory_space<vmem>>, vector<128x128xbf16>
    %cst_8 = arith.constant dense<0.000000e+00> : vector<8x128xf32>
    %11 = tpu.matmul %9, %10, %cst_8 {dimension_numbers = #tpu.dot_dimension_numbers<[1], [0], [0], [1], [0, 0, 1, 1], [], []>} : vector<8x128xbf16>, vector<128x128xbf16>, vector<8x128xf32> -> vector<8x128xf32>
    %c0_9 = arith.constant 0 : index
    %c0_10 = arith.constant 0 : index
    %12 = vector.load %arg5[%c0_9, %c0_10] : memref<1x128xf32, #tpu.memory_space<vmem>>, vector<1x128xf32>
    %13 = vector.broadcast %12 : vector<1x128xf32> to vector<8x128xf32>
    %14 = arith.addf %11, %13 : vector<8x128xf32>
    %cst_11 = arith.constant 0.000000e+00 : f32
    %15 = vector.broadcast %cst_11 : f32 to vector<8x128xf32>
    %16 = arith.maximumf %14, %15 : vector<8x128xf32>
    %17 = arith.truncf %16 : vector<8x128xf32> to vector<8x128xbf16>
    %c0_12 = arith.constant 0 : index
    %c0_13 = arith.constant 0 : index
    %18 = vector.load %arg6[%c0_12, %c0_13] : memref<128x128xbf16, #tpu.memory_space<vmem>>, vector<128x128xbf16>
    %cst_14 = arith.constant dense<0.000000e+00> : vector<8x128xf32>
    %19 = tpu.matmul %17, %18, %cst_14 {dimension_numbers = #tpu.dot_dimension_numbers<[1], [0], [0], [1], [0, 0, 1, 1], [], []>} : vector<8x128xbf16>, vector<128x128xbf16>, vector<8x128xf32> -> vector<8x128xf32>
    %c0_15 = arith.constant 0 : index
    %c0_16 = arith.constant 0 : index
    %20 = vector.load %arg7[%c0_15, %c0_16] : memref<1x128xf32, #tpu.memory_space<vmem>>, vector<1x128xf32>
    %21 = vector.broadcast %20 : vector<1x128xf32> to vector<8x128xf32>
    %22 = arith.addf %19, %21 : vector<8x128xf32>
    %23 = arith.truncf %22 : vector<8x128xf32> to vector<8x128xbf16>
    %24 = math.tanh %23 : vector<8x128xbf16>
    %c0_17 = arith.constant 0 : index
    %c0_18 = arith.constant 0 : index
    %25 = vector.load %arg8[%c0_17, %c0_18] : memref<8x128xbf16, #tpu.memory_space<vmem>>, vector<8x128xbf16>
    tpu.vector_store %arg8[%c0_17, %c0_18], %24 {strides = array<i32>} : memref<8x128xbf16, #tpu.memory_space<vmem>>, vector<8x128xbf16>,
    return
  }
  func.func @transform_0(%arg0: i32) -> (i32, i32) {
    %c0_i32 = arith.constant 0 : i32
    %c0_i32_0 = arith.constant 0 : i32
    return %arg0, %c0_i32 : i32, i32
  }
  func.func @transform_1(%arg0: i32) -> (i32, i32) {
    %c0_i32 = arith.constant 0 : i32
    %c0_i32_0 = arith.constant 0 : i32
    %c0_i32_1 = arith.constant 0 : i32
    return %c0_i32, %c0_i32_0 : i32, i32
  }
  func.func @transform_2(%arg0: i32) -> (i32, i32) {
    %c0_i32 = arith.constant 0 : i32
    %c0_i32_0 = arith.constant 0 : i32
    %c0_i32_1 = arith.constant 0 : i32
    return %c0_i32, %c0_i32_0 : i32, i32
  }
  func.func @transform_3(%arg0: i32) -> (i32, i32) {
    %c0_i32 = arith.constant 0 : i32
    %c0_i32_0 = arith.constant 0 : i32
    %c0_i32_1 = arith.constant 0 : i32
    return %c0_i32, %c0_i32_0 : i32, i32
  }
  func.func @transform_4(%arg0: i32) -> (i32, i32) {
    %c0_i32 = arith.constant 0 : i32
    %c0_i32_0 = arith.constant 0 : i32
    %c0_i32_1 = arith.constant 0 : i32
    return %c0_i32, %c0_i32_0 : i32, i32
  }
  func.func @transform_5(%arg0: i32) -> (i32, i32) {
    %c0_i32 = arith.constant 0 : i32
    %c0_i32_0 = arith.constant 0 : i32
    %c0_i32_1 = arith.constant 0 : i32
    return %c0_i32, %c0_i32_0 : i32, i32
  }
  func.func @transform_6(%arg0: i32) -> (i32, i32) {
    %c0_i32 = arith.constant 0 : i32
    %c0_i32_0 = arith.constant 0 : i32
    %c0_i32_1 = arith.constant 0 : i32
    return %c0_i32, %c0_i32_0 : i32, i32
  }
  func.func @transform_7(%arg0: i32) -> (i32, i32) {
    %c0_i32 = arith.constant 0 : i32
    %c0_i32_0 = arith.constant 0 : i32
    return %arg0, %c0_i32 : i32, i32
  }
}

</mosaic_0001>

<bundles_post_ra>
// kernel: tpu_custom_call.1
= control target key start
LH: loop header
LB: loop body
LE: loop exit
PB: predicated region body
PF: predicated region fallthrough
CT: control target
= control target key end

     0   :  { %12 = vsyncpa [#allocation3], 0  ;;  %s768_s0 = inlined_call_operand.hbm [shape: f32[8,16], index: 0, kind: input, shape index: {}]   ;;  %s769_s1 = inlined_call_operand.hbm [shape: bf16[16,128], index: 1, kind: input, shape index: {}]   ;;  %s770_s2 = inlined_call_operand.vmem [shape: f32[1,128], index: 2, kind: input, shape index: {}]   ;;  %s771_s3 = inlined_call_operand.hbm [shape: bf16[128,128], index: 3, kind: input, shape index: {}]   ;;  %s772_s4 = inlined_call_operand.vmem [shape: f32[1,128], index: 4, kind: input, shape index: {}]   ;;  %s773_s5 = inlined_call_operand.hbm [shape: bf16[128,128], index: 5, kind: input, shape index: {}]   ;;  %s774_s6 = inlined_call_operand.vmem [shape: f32[1,128], index: 6, kind: input, shape index: {}]   ;;  %s775_s7 = inlined_call_operand.hbm [shape: bf16[8,128], index: 7, kind: output, shape index: {}]  }
   0x1   :  { %13 = vsyncpa [#allocation6], 0 }
   0x2   :  { %14 = vsyncpa [#allocation9], 0 }
   0x3   :  { %15 = vsyncpa [#allocation4], 0  ;;  %s621_s24 = smov [#allocation5]   ;;  %s503_s28 = scalar_lea.hbm %s769_s1, 128 }
   0x4   :  { %s31_s25 = sshll.u32 %s621_s24, 4  ;;  %p504_p0 = scmp.ne.s32.totalorder %s769_s1, %s503_s28  ;;  %s32_s25 = int_to_ptr.vmem [resolvable:$true] %s31_s25 }
   0x5   :  { %p507_p1 = scmp.lt.u32.totalorder %s503_s28, %s769_s1 }
   0x7   :  { %p509_p2 = pnand %p507_p1, %p504_p0 }
   0x9   :  { %512 = shalt.err (!%p509_p2)
}
   0xa   :  { %s513_s10 = scalar_lea.vmem %s32_s25, 128  ;;  %p518_p4 = scmp.lt.s32.totalorder %s32_s25, %s32_s25 }
   0xb   :  { %p514_p3 = scmp.ne.s32.totalorder %s32_s25, %s513_s10  ;;  %p519_p5 = scmp.lt.s32.totalorder %s513_s10, %s513_s10 }
   0xd   :  { %p520_p6 = por %p519_p5, %p518_p4 }
   0xf   :  { %p521_p7 = pnand %p520_p6, %p514_p3 }
  0x11   :  { %524 = shalt.err (!%p521_p7)
}
  0x12   :  { %s622_s11 = smov 64   ;;  %s623_s12 = smov 4  }
  0x13   :  { %37 = dma.hbm_to_vmem [thread:$0]  %s769_s1, 128, %s32_s25, [#allocation6], %s622_s11, %s622_s11, %s623_s12  }
  0x14   :  { %s624_s15 = smov [#allocation2]   ;;  %s625_s17 = smov [#allocation7]  }
  0x15   :  { %s22_s16 = sshll.u32 %s624_s15, 4  ;;  %s45_s18 = sshll.u32 %s625_s17, 4  ;;  %s23_s16 = int_to_ptr.vmem [resolvable:$true] %s22_s16  ;;  %s46_s18 = int_to_ptr.vmem [resolvable:$true] %s45_s18 }
  0x16   :  { %s525_s21 = scalar_lea.hbm %s768_s0, 128 }
  0x17   :  { %p526_p8 = scmp.ne.s32.totalorder %s768_s0, %s525_s21  ;;  %p529_p9 = scmp.lt.u32.totalorder %s525_s21, %s768_s0 }
  0x19   :  { %p531_p10 = pnand %p529_p9, %p526_p8 }
  0x1b   :  { %534 = shalt.err (!%p531_p10)
}
  0x1c   :  { %s535_s1 = scalar_lea.vmem %s23_s16, 128  ;;  %p540_p12 = scmp.lt.s32.totalorder %s23_s16, %s23_s16 }
  0x1d   :  { %p536_p11 = scmp.ne.s32.totalorder %s23_s16, %s535_s1  ;;  %p541_p13 = scmp.lt.s32.totalorder %s535_s1, %s535_s1 }
  0x1f   :  { %p542_p0 = por %p541_p13, %p540_p12 }
  0x21   :  { %p543_p1 = pnand %p542_p0, %p536_p11 }
  0x23   :  { %546 = shalt.err (!%p543_p1)
}
  0x24   :  { %25 = dma.hbm_to_vmem [thread:$0]  %s768_s0, 128, %s23_s16, [#allocation3]  }
  0x25   :  { %s547_s30 = scalar_lea.hbm %s771_s3, 1024 }
  0x26   :  { %p548_p2 = scmp.ne.s32.totalorder %s771_s3, %s547_s30  ;;  %p551_p3 = scmp.lt.u32.totalorder %s547_s30, %s771_s3 }
  0x28   :  { %p553_p4 = pnand %p551_p3, %p548_p2 }
  0x2a   :  { %556 = shalt.err (!%p553_p4)
}
  0x2b   :  { %s557_s14 = scalar_lea.vmem %s46_s18, 1024  ;;  %p562_p6 = scmp.lt.s32.totalorder %s46_s18, %s46_s18 }
  0x2c   :  { %p558_p5 = scmp.ne.s32.totalorder %s46_s18, %s557_s14  ;;  %p563_p7 = scmp.lt.s32.totalorder %s557_s14, %s557_s14 }
  0x2e   :  { %p564_p8 = por %p563_p7, %p562_p6 }
  0x30   :  { %p565_p9 = pnand %p564_p8, %p558_p5 }
  0x32   :  { %568 = shalt.err (!%p565_p9)
}
  0x33   :  { %51 = dma.hbm_to_vmem [thread:$0]  %s771_s3, 1024, %s46_s18, [#allocation6], %s622_s11, %s622_s11, %s623_s12  }
  0x34   :  { %s626_s16 = smov [#allocation8]   ;;  %s569_s21 = scalar_lea.hbm %s773_s5, 1024 }
  0x35   :  { %s59_s17 = sshll.u32 %s626_s16, 4  ;;  %p570_p10 = scmp.ne.s32.totalorder %s773_s5, %s569_s21  ;;  %s60_s17 = int_to_ptr.vmem [resolvable:$true] %s59_s17 }
  0x36   :  { %p573_p11 = scmp.lt.u32.totalorder %s569_s21, %s773_s5 }
  0x38   :  { %p575_p12 = pnand %p573_p11, %p570_p10 }
  0x3a   :  { %578 = shalt.err (!%p575_p12)
}
  0x3b   :  { %s579_s1 = scalar_lea.vmem %s60_s17, 1024  ;;  %p584_p0 = scmp.lt.s32.totalorder %s60_s17, %s60_s17 }
  0x3c   :  { %p580_p13 = scmp.ne.s32.totalorder %s60_s17, %s579_s1  ;;  %p585_p1 = scmp.lt.s32.totalorder %s579_s1, %s579_s1 }
  0x3e   :  { %p586_p2 = por %p585_p1, %p584_p0 }
  0x40   :  { %p587_p3 = pnand %p586_p2, %p580_p13 }
  0x42   :  { %590 = shalt.err (!%p587_p3)
}
  0x43   :  { %65 = dma.hbm_to_vmem [thread:$0]  %s773_s5, 1024, %s60_s17, [#allocation9], %s622_s11, %s622_s11, %s623_s12  }
  0x44   :  { %613 = dma.done.wait [#allocation3], 128  }
  0x45   :  { %614 = vsyncadd [#allocation3], 4294967168 }
  0x46   :  { %615 = dma.done.wait [#allocation6], 1152  }
  0x47   :  { %616 = vsyncadd [#allocation6], 4294966144 }
  0x48   :  { %617 = dma.done.wait [#allocation9], 1024  }
  0x49   :  { %618 = vsyncadd [#allocation9], 4294966272  ;;  %v627_v0 = vmov 0.0   ;;  %vm628_vm0 = vmmov 0   ;;  %v484_v1 = vld [vmem:[#allocation5] sm:$0xff]   ;;  %v81_v2 = vld [vmem:[#allocation2] sm:$0xff] }
  0x4a   :  { %429 = vmatprep.subr.bf16.mxu0 %v627_v0  ;;  %431 = vmatprep.mubr.msk.bf16.mxu0 %vm628_vm0, %v627_v0  ;;  %v82_v3 = vpack.c.bf16 %v81_v2, %v81_v2  ;;  %vm98_vm1 = vcmask 130048   ;;  %v485_v4 = vld [vmem:[#allocation7] sm:$0xff]   ;;  %v486_v5 = vld [vmem:[#allocation7 + $0x8] sm:$0xff]   ;;  %v487_v6 = vld [vmem:[#allocation7 + $0x10] sm:$0xff]  }
  0x4b   :  { %435 = vmatprep.subr.bf16.mxu1 %v627_v0  ;;  %451 = vmatprep.mubr.msk.bf16.mxu1 %vm628_vm0, %v627_v0  ;;  %v488_v7 = vld [vmem:[#allocation7 + $0x18] sm:$0xff]   ;;  %v489_v8 = vld [vmem:[#allocation7 + $0x20] sm:$0xff]   ;;  %v490_v9 = vld [vmem:[#allocation7 + $0x28] sm:$0xff]  }
  0x4c   :  { %430 = vmatpush3.bf16.msra.mxu0 %v484_v1  ;;  %436 = vmatpush3.bf16.msra.mxu1 %v485_v4  ;;  %v491_v10 = vld [vmem:[#allocation7 + $0x30] sm:$0xff]   ;;  %v492_v11 = vld [vmem:[#allocation7 + $0x38] sm:$0xff]   ;;  %v493_v12 = vld [vmem:[#allocation8] sm:$0xff]  }
  0x4d   :  { %455 = vmatprep.subr.bf16.mxu0 %v627_v0  ;;  %437 = vmatprep.subr.bf16.mxu1 %v627_v0  ;;  %v494_v13 = vld [vmem:[#allocation8 + $0x8] sm:$0xff]   ;;  %v495_v14 = vld [vmem:[#allocation8 + $0x10] sm:$0xff]   ;;  %v496_v15 = vld [vmem:[#allocation8 + $0x18] sm:$0xff]  }
  0x4e   :  { %v497_v16 = vld [vmem:[#allocation8 + $0x20] sm:$0xff]   ;;  %v498_v17 = vld [vmem:[#allocation8 + $0x28] sm:$0xff]   ;;  %v388_v18 = vld [vmem:[%s770_s2] ss:$0 sm:$0xff] }
  0x4f   :  { %432 = vmatmul.mubr.msk.bf16.vlgmr.msra.gmra.mrb[0].mxu0 %vm98_vm1, %v82_v3  ;;  %v499_v26 = vld [vmem:[#allocation8 + $0x30] sm:$0xff]   ;;  %v500_v27 = vld [vmem:[#allocation8 + $0x38] sm:$0xff]  }
  0x50   :  { %471 = vmatprep.mubr.msk.bf16.mxu0 %vm628_vm0, %v627_v0  ;;  %438 = vmatpush3.bf16.msra.mxu1 %v486_v5  ;;  %v391_v28 = vld [vmem:[%s772_s4] ss:$0 sm:$0xff]  ;;  %s629_s4 = smov [#allocation10]  }
  0x51   :  { %439 = vmatprep.subr.bf16.mxu1 %v627_v0  ;;  %456 = vmatpush3.bf16.msra.mxu0 %v493_v12  ;;  %v400_v36 = vld [vmem:[%s774_s6] ss:$0 sm:$0xff]  ;;  %s377_s28 = sshll.u32 %s629_s4, 4  ;;  %s378_s28 = int_to_ptr.vmem [resolvable:$true] %s377_s28 }
  0x52   :  { %457 = vmatprep.subr.bf16.mxu0 %v627_v0  ;;  %s591_s29 = scalar_lea.vmem %s378_s28, 64  ;;  %p596_p5 = scmp.lt.s32.totalorder %s378_s28, %s378_s28 }
  0x53   :  { %p592_p4 = scmp.ne.s32.totalorder %s378_s28, %s591_s29  ;;  %p597_p6 = scmp.lt.s32.totalorder %s591_s29, %s591_s29 }
  0x54   :  { %440 = vmatpush3.bf16.msra.mxu1 %v487_v6 }
  0x55   :  { %441 = vmatprep.subr.bf16.mxu1 %v627_v0  ;;  %458 = vmatpush3.bf16.msra.mxu0 %v494_v13  ;;  %p598_p7 = por %p597_p6, %p596_p5 }
  0x56   :  { %459 = vmatprep.subr.bf16.mxu0 %v627_v0 }
  0x57   :  { %p599_p8 = pnand %p598_p7, %p592_p4 }
  0x58   :  { %442 = vmatpush3.bf16.msra.mxu1 %v488_v7 }
  0x59   :  { %443 = vmatprep.subr.bf16.mxu1 %v627_v0  ;;  %460 = vmatpush3.bf16.msra.mxu0 %v495_v14 }
  0x5a   :  { %461 = vmatprep.subr.bf16.mxu0 %v627_v0 }
  0x5c   :  { %444 = vmatpush3.bf16.msra.mxu1 %v489_v8 }
  0x5d   :  { %445 = vmatprep.subr.bf16.mxu1 %v627_v0  ;;  %462 = vmatpush3.bf16.msra.mxu0 %v496_v15 }
  0x5e   :  { %463 = vmatprep.subr.bf16.mxu0 %v627_v0 }
  0x60   :  { %446 = vmatpush3.bf16.msra.mxu1 %v490_v9 }
  0x61   :  { %447 = vmatprep.subr.bf16.mxu1 %v627_v0  ;;  %464 = vmatpush3.bf16.msra.mxu0 %v497_v16 }
  0x62   :  { %465 = vmatprep.subr.bf16.mxu0 %v627_v0 }
  0x64   :  { %448 = vmatpush3.bf16.msra.mxu1 %v491_v10 }
  0x65   :  { %449 = vmatprep.subr.bf16.mxu1 %v627_v0  ;;  %466 = vmatpush3.bf16.msra.mxu0 %v498_v17 }
  0x66   :  { %467 = vmatprep.subr.bf16.mxu0 %v627_v0 }
  0x68   :  { %450 = vmatpush3.bf16.msra.mxu1 %v492_v11 }
  0x69   :  { %468 = vmatpush3.bf16.msra.mxu0 %v499_v26 }
  0x6a   :  { %469 = vmatprep.subr.bf16.mxu0 %v627_v0 }
  0x6d   :  { %470 = vmatpush3.bf16.msra.mxu0 %v500_v27 }
 0x122   :  { %v136_v19 = vpop.f32.mrb[0].mxu0 }
 0x123   :  { %v137_v20 = vadd.f32 %v388_v18, %v136_v19  ;;  %v433_v21 = vpop.f32.mrb[1].mxu0 }
 0x124   :  { %v139_v22 = vpop.f32.mrb[2].mxu0 }
 0x125   :  { %v142_v23 = vmax.f32 %v137_v20, 0.0  ;;  %v434_v24 = vpop.f32.mrb[3].mxu0 }
 0x127   :  { %v143_v25 = vpack.c.bf16 %v142_v23, %v142_v23 }
 0x129   :  { %452 = vmatmul.mubr.bf16.vlgmr.msra.gmra.mrb[0].mxu1 %v143_v25 }
 0x1fc   :  { %v249_v29 = vpop.f32.mrb[0].mxu1 }
 0x1fd   :  { %v250_v30 = vadd.f32 %v391_v28, %v249_v29  ;;  %v453_v31 = vpop.f32.mrb[1].mxu1 }
 0x1fe   :  { %v252_v32 = vpop.f32.mrb[2].mxu1 }
 0x1ff   :  { %v255_v33 = vmax.f32 %v250_v30, 0.0  ;;  %v454_v34 = vpop.f32.mrb[3].mxu1 }
 0x201   :  { %v256_v35 = vpack.c.bf16 %v255_v33, %v255_v33 }
 0x203   :  { %472 = vmatmul.mubr.bf16.vlgmr.msra.gmra.mrb[4].mxu0 %v256_v35 }
 0x2d6   :  { %v362_v37 = vpop.f32.mrb[4].mxu0 }
 0x2d7   :  { %v363_v38 = vadd.f32 %v400_v36, %v362_v37  ;;  %v473_v39 = vpop.f32.mrb[5].mxu0 }
 0x2d8   :  { %v365_v40 = vpop.f32.mrb[6].mxu0 }
 0x2d9   :  { %v368_v41 = vpack.c.bf16 %v363_v38, %v363_v38  ;;  %v474_v42 = vpop.f32.mrb[7].mxu0 }
 0x2db   :  { %501 = vtanh.bf16 %v368_v41 }
 0x2e6   :  { %v502_v43 = vpop.eup %501 }
 0x2e7   :  { %370 = vst [vmem:[#allocation10] sm:$0xf] %v502_v43 }
 0x2e8   :  { %602 = shalt.err (!%p599_p8)
}
 0x2e9   :  { %s603_s8 = scalar_lea.hbm %s775_s7, 64 }
 0x2ea   :  { %p604_p9 = scmp.ne.s32.totalorder %s775_s7, %s603_s8  ;;  %p607_p10 = scmp.lt.u32.totalorder %s603_s8, %s775_s7 }
 0x2ec   :  { %p609_p11 = pnand %p607_p10, %p604_p9 }
 0x2ee   :  { %612 = shalt.err (!%p609_p11)
}
 0x2ef   :  { %380 = dma.vmem_to_hbm [thread:$0]  %s378_s28, 64, %s775_s7, [#allocation4]  }
 0x2f0   :  { %619 = dma.done.wait [#allocation4], 64  }
 0x2f1   :  { %620 = vsyncadd [#allocation4], 4294967232 }
 0x2f2   :  { %384 = vsyncpa [#allocation3], 1 }
 0x2f3   :  { %385 = vsyncpa [#allocation6], 1 }
 0x2f4   :  { %386 = vsyncpa [#allocation9], 1 }
 0x2f5   :  { %387 = vsyncpa [#allocation4], 1 }

</bundles_post_ra>
